<compile_context>
chip_gen: v5e
topology: v5e:2x2
jax: 0.10.0
libtpu: 0.0.40
codegen_flags: <defaults>
</compile_context>

<pallas_src>
import functools

import jax
import jax.numpy as jnp
from jax import lax
from jax.experimental import pallas as pl
from jax.experimental.pallas import tpu as pltpu


def _inclusive_prefix_sum_lanes(x):
    """Hillis-Steele inclusive prefix sum along the last (lane) axis.

    Replaces the old O(N^2) triangular-matmul rank computation with
    ceil(log2(N)) shift-adds on the VPU (zero-filled shifts built from a
    static slice + concatenate, so no roll-direction ambiguity).
    """
    p, n = x.shape
    shift = 1
    while shift < n:
        shifted = jnp.concatenate(
            [jnp.zeros((p, shift), x.dtype), x[:, : n - shift]], axis=1)
        x = x + shifted
        shift *= 2
    return x


def _point_avgpool_kernel(points_ref, feats_ref, xyz_out_ref, feat_out_ref,
                          cdist_ref, *, npoint, nsample, radius,
                          use_bf16_matmul):
    x = points_ref[...].astype(jnp.float32)                  # (N, 3)
    N = x.shape[0]

    iota_row = lax.broadcasted_iota(jnp.int32, (1, N), 1)    # lane iota
    iota_col = lax.broadcasted_iota(jnp.int32, (N, 1), 0)    # sublane iota
    ones_1x3 = jnp.ones((1, 3), jnp.float32)

    # ---------------- furthest point sampling (fori_loop, O(N) per step) ----
    def fps_body(i, mindist):
        # argmax of the running min-distance; ties -> lowest index.
        # Iteration 0: mindist is constant -> picks index 0 (pointnet2 seed).
        mx = jnp.max(mindist)
        cand = jnp.where(mindist == mx, iota_row, jnp.int32(N))
        farthest = jnp.min(cand)

        # Gather the selected point's coordinates with a masked sublane
        # reduce (VPU/XLU only — no M=1 one-hot matmul).
        sel = iota_col == farthest                                    # (N, 1)
        x_far = jnp.sum(jnp.where(sel, x, 0.0), axis=0, keepdims=True)  # (1, 3)

        # Squared distances from this center, stable (x - y)^2 form.
        diff = x - x_far                                              # (N, 3)
        d_row = lax.dot_general(ones_1x3, diff * diff,
                                (((1,), (1,)), ((), ())),
                                preferred_element_type=jnp.float32)   # (1, N)
        d_row = jnp.maximum(d_row, 0.0)

        # Write results directly at dynamic row i (no onehot @ D / onehot @ x).
        xyz_out_ref[pl.ds(i, 1), :] = x_far.astype(xyz_out_ref.dtype)
        cdist_ref[pl.ds(i, 1), :] = d_row

        return jnp.minimum(mindist, d_row)

    lax.fori_loop(0, npoint, fps_body,
                  jnp.full((1, N), 1e10, jnp.float32))

    # ---------------- ball query + average pooling --------------------------
    cdist = cdist_ref[...]                                    # (npoint, N)
    r2 = jnp.float32(radius * radius)
    mask = cdist < r2
    mask_f = mask.astype(jnp.float32)

    rank = _inclusive_prefix_sum_lanes(mask_f)                # (npoint, N)
    cnt = jnp.sum(mask_f, axis=1, keepdims=True)              # (npoint, 1)

    nsample_f = jnp.float32(nsample)
    selected = jnp.where(mask & (rank <= nsample_f), 1.0, 0.0)   # first nsample hits
    first = jnp.where(mask & (rank == 1.0), 1.0, 0.0)            # one-hot of first hit
    pad = jnp.maximum(nsample_f - cnt, 0.0)                      # padding repeats
    weights = selected + pad * first                             # (npoint, N)

    f = feats_ref[...]
    if use_bf16_matmul:
        # weights are exact small integers -> exactly representable in bf16.
        weights = weights.astype(jnp.bfloat16)
        f = f.astype(jnp.bfloat16)
    pooled = jnp.dot(weights, f, preferred_element_type=jnp.float32)
    pooled = pooled * jnp.float32(1.0 / float(nsample))

    feat_out_ref[...] = pooled.astype(feat_out_ref.dtype)


def point_avgpool(points, features, *, radius, stride, gather_size=None,
                  ceil_mode=True, use_bf16_matmul=False):
    """points: (B, N, 3), features: (B, N, C) -> ((B, npoint, 3), (B, npoint, C))."""
    B, N, _ = points.shape
    C = features.shape[-1]
    npoint = (N + stride - 1) // stride if ceil_mode else N // stride
    nsample = stride * stride if gather_size is None else gather_size

    kern = functools.partial(_point_avgpool_kernel,
                             npoint=npoint, nsample=nsample,
                             radius=float(radius),
                             use_bf16_matmul=use_bf16_matmul)

    # Advisory cost estimate for XLA's scheduler.
    flops = B * (2 * npoint * N * C          # weights @ features
                 + npoint * N * 12           # FPS distance rows + argmax
                 + npoint * N * 10)          # ball query + prefix-sum scan
    bytes_accessed = 4 * B * (N * 3 + N * C + npoint * 3 + npoint * C)
    cost = pl.CostEstimate(flops=int(flops), transcendentals=0,
                           bytes_accessed=int(bytes_accessed))

    # Explicit VMEM budget with headroom (no N^2 residency anymore):
    # double-buffered input/output blocks + cdist scratch + elementwise temps.
    vmem_est = 4 * (2 * N * 3 + 2 * N * C + 2 * npoint * (3 + C)
                    + 6 * npoint * N + 8 * N) + (2 << 20)
    vmem_limit = int(min(max(vmem_est, 32 * 1024 * 1024), 64 * 1024 * 1024))

    return pl.pallas_call(
        kern,
        out_shape=(jax.ShapeDtypeStruct((B, npoint, 3), points.dtype),
                   jax.ShapeDtypeStruct((B, npoint, C), features.dtype)),
        grid=(B,),
        in_specs=[pl.BlockSpec((None, N, 3), lambda b: (b, 0, 0)),
                  pl.BlockSpec((None, N, C), lambda b: (b, 0, 0))],
        out_specs=(pl.BlockSpec((None, npoint, 3), lambda b: (b, 0, 0)),
                   pl.BlockSpec((None, npoint, C), lambda b: (b, 0, 0))),
        scratch_shapes=[pltpu.VMEM((npoint, N), jnp.float32)],
        compiler_params=pltpu.CompilerParams(
            dimension_semantics=("parallel",),      # batch elems independent (v7x 2 TCs)
            vmem_limit_bytes=vmem_limit),
        cost_estimate=cost,
    )(points, features)


if __name__ == "__main__":
    key = jax.random.PRNGKey(0)
    kp, kf = jax.random.split(key)

    B, N, C = 2, 16, 8
    radius, stride = 0.5, 4            # -> npoint = 4, nsample = stride**2 = 16

    points = jax.random.uniform(kp, (B, N, 3), dtype=jnp.float32)
    features = jax.random.normal(kf, (B, N, C), dtype=jnp.float32)

    sel_xyz, pool_feat = point_avgpool(points, features,
                                       radius=radius, stride=stride)
    sel_xyz, pool_feat = jax.block_until_ready((sel_xyz, pool_feat))

    assert sel_xyz.shape == (B, 4, 3) and pool_feat.shape == (B, 4, C)
    assert bool(jnp.all(jnp.isfinite(sel_xyz)))
    assert bool(jnp.all(jnp.isfinite(pool_feat)))
    # FPS seed is index 0 -> first selected center must be the first point.
    assert bool(jnp.allclose(sel_xyz[:, 0, :], points[:, 0, :]))
    print("KERNEL_OK")
</pallas_src>

<mosaic_0001>
module attributes {stable_mosaic.version = 11 : i64} {
  func.func @_point_avgpool_kernel(%arg0: i32, %arg1: memref<1x16x3xf32, #tpu.memory_space<vmem>>, %arg2: memref<1x16x8xf32, #tpu.memory_space<vmem>>, %arg3: memref<1x4x3xf32, #tpu.memory_space<vmem>>, %arg4: memref<1x4x8xf32, #tpu.memory_space<vmem>>, %arg5: memref<4x16xf32, #tpu.memory_space<vmem>>) attributes {dimension_semantics = [#tpu.dimension_semantics<parallel>], iteration_bounds = array<i64: 2>, scalar_prefetch = 0 : i64, scratch_operands = 1 : i64, tpu.core_type = #tpu.core_type<tc>, window_params = [{transform_indices = @transform_0, window_bounds = array<i64: 1, 16, 3>}, {transform_indices = @transform_1, window_bounds = array<i64: 1, 16, 8>}, {transform_indices = @transform_2, window_bounds = array<i64: 1, 4, 3>}, {transform_indices = @transform_3, window_bounds = array<i64: 1, 4, 8>}]} {
    %c0 = arith.constant 0 : index
    %c0_0 = arith.constant 0 : index
    %c0_1 = arith.constant 0 : index
    %0 = vector.load %arg1[%c0, %c0_0, %c0_1] : memref<1x16x3xf32, #tpu.memory_space<vmem>>, vector<1x16x3xf32>
    %1 = vector.shape_cast %0 : vector<1x16x3xf32> to vector<16x3xf32>
    %2 = tpu.iota {dimensions = array<i32: 1>} : vector<1x16xi32>
    %3 = tpu.iota {dimensions = array<i32: 0>} : vector<16x1xi32>
    %cst = arith.constant 1.000000e+00 : f32
    %4 = vector.broadcast %cst : f32 to vector<1x3xf32>
    %cst_2 = arith.constant 1.000000e+10 : f32
    %5 = vector.broadcast %cst_2 : f32 to vector<1x16xf32>
    %c0_i32 = arith.constant 0 : i32
    %c4_i32 = arith.constant 4 : i32
    %6 = arith.addi %c0_i32, %c4_i32 : i32
    %c1_i32 = arith.constant 1 : i32
    %7 = scf.for %arg6 = %c0_i32 to %6 step %c1_i32 iter_args(%arg7 = %5) -> (vector<1x16xf32>)  : i32 {
      %58 = vector.shape_cast %arg7 : vector<1x16xf32> to vector<1x1x16xf32>
      %cst_28 = arith.constant dense<0xFF800000> : vector<1xf32>
      %59 = vector.multi_reduction <maximumf>, %58, %cst_28 [1, 2] : vector<1x1x16xf32> to vector<1xf32>
      %60 = vector.shape_cast %59 : vector<1xf32> to vector<1x1x1xf32>
      %61 = vector.extract %60[0, 0, 0] : f32 from vector<1x1x1xf32>
      %62 = vector.broadcast %61 : f32 to vector<1x16xf32>
      %63 = arith.cmpf oeq, %arg7, %62 : vector<1x16xf32>
      %c16_i32 = arith.constant 16 : i32
      %64 = vector.broadcast %c16_i32 : i32 to vector<1x16xi32>
      %65 = arith.select %63, %2, %64 : vector<1x16xi1>, vector<1x16xi32>
      %66 = vector.shape_cast %65 : vector<1x16xi32> to vector<1x1x16xi32>
      %cst_29 = arith.constant dense<2147483647> : vector<1xi32>
      %67 = vector.multi_reduction <minsi>, %66, %cst_29 [1, 2] : vector<1x1x16xi32> to vector<1xi32>
      %68 = vector.shape_cast %67 : vector<1xi32> to vector<1x1x1xi32>
      %69 = vector.extract %68[0, 0, 0] : i32 from vector<1x1x1xi32>
      %70 = vector.broadcast %69 : i32 to vector<16x1xi32>
      %71 = arith.cmpi eq, %3, %70 : vector<16x1xi32>
      %cst_30 = arith.constant 0.000000e+00 : f32
      %72 = vector.shape_cast %71 : vector<16x1xi1> to vector<16x1xi1>
      %73 = vector.broadcast %72 : vector<16x1xi1> to vector<16x3xi1>
      %74 = vector.broadcast %cst_30 : f32 to vector<16x3xf32>
      %75 = arith.select %73, %1, %74 : vector<16x3xi1>, vector<16x3xf32>
      %cst_31 = arith.constant dense<0.000000e+00> : vector<3xf32>
      %76 = vector.multi_reduction <add>, %75, %cst_31 [0] : vector<16x3xf32> to vector<3xf32>
      %77 = vector.shape_cast %76 : vector<3xf32> to vector<1x3xf32>
      %78 = vector.broadcast %77 : vector<1x3xf32> to vector<16x3xf32>
      %79 = arith.subf %1, %78 : vector<16x3xf32>
      %80 = arith.mulf %79, %79 : vector<16x3xf32>
      %cst_32 = arith.constant dense<0.000000e+00> : vector<1x16xf32>
      %81 = tpu.matmul %4, %80, %cst_32 {dimension_numbers = #tpu.dot_dimension_numbers<[1], [1], [0], [0], [0, 0, 1, 0], [], []>} : vector<1x3xf32>, vector<16x3xf32>, vector<1x16xf32> -> vector<1x16xf32>
      %cst_33 = arith.constant 0.000000e+00 : f32
      %82 = vector.broadcast %cst_33 : f32 to vector<1x16xf32>
      %83 = arith.maximumf %81, %82 : vector<1x16xf32>
      %c0_34 = arith.constant 0 : index
      %84 = arith.index_cast %arg6 : i32 to index
      %c0_35 = arith.constant 0 : index
      %85 = vector.load %arg3[%c0_34, %84, %c0_35] : memref<1x4x3xf32, #tpu.memory_space<vmem>>, vector<1x1x3xf32>
      %86 = vector.shape_cast %85 : vector<1x1x3xf32> to vector<1x3xf32>
      %87 = vector.shape_cast %77 : vector<1x3xf32> to vector<1x1x3xf32>
      tpu.vector_store %arg3[%c0_34, %84, %c0_35], %87 {strides = array<i32>} : memref<1x4x3xf32, #tpu.memory_space<vmem>>, vector<1x1x3xf32>,
      %88 = arith.index_cast %arg6 : i32 to index
      %c0_36 = arith.constant 0 : index
      %89 = vector.load %arg5[%88, %c0_36] : memref<4x16xf32, #tpu.memory_space<vmem>>, vector<1x16xf32>
      tpu.vector_store %arg5[%88, %c0_36], %83 {strides = array<i32>} : memref<4x16xf32, #tpu.memory_space<vmem>>, vector<1x16xf32>,
      %90 = arith.minimumf %arg7, %83 : vector<1x16xf32>
      scf.yield %90 : vector<1x16xf32>
    }
    %c4_i32_3 = arith.constant 4 : i32
    %c0_4 = arith.constant 0 : index
    %c0_5 = arith.constant 0 : index
    %8 = vector.load %arg5[%c0_4, %c0_5] : memref<4x16xf32, #tpu.memory_space<vmem>>, vector<4x16xf32>
    %cst_6 = arith.constant 2.500000e-01 : f32
    %9 = vector.broadcast %cst_6 : f32 to vector<4x16xf32>
    %10 = arith.cmpf olt, %8, %9 : vector<4x16xf32>
    %11 = arith.extui %10 : vector<4x16xi1> to vector<4x16xi32>
    %12 = arith.sitofp %11 : vector<4x16xi32> to vector<4x16xf32>
    %cst_7 = arith.constant 0.000000e+00 : f32
    %13 = vector.broadcast %cst_7 : f32 to vector<4x1xf32>
    %14 = vector.extract_strided_slice %12 {offsets = [0, 0], sizes = [4, 15], strides = [1, 1]} : vector<4x16xf32> to vector<4x15xf32>
    %15 = tpu.concatenate %13, %14 in 1 : vector<4x1xf32>, vector<4x15xf32> -> vector<4x16xf32>
    %16 = arith.addf %12, %15 : vector<4x16xf32>
    %cst_8 = arith.constant 0.000000e+00 : f32
    %17 = vector.broadcast %cst_8 : f32 to vector<4x2xf32>
    %18 = vector.extract_strided_slice %16 {offsets = [0, 0], sizes = [4, 14], strides = [1, 1]} : vector<4x16xf32> to vector<4x14xf32>
    %19 = tpu.concatenate %17, %18 in 1 : vector<4x2xf32>, vector<4x14xf32> -> vector<4x16xf32>
    %20 = arith.addf %16, %19 : vector<4x16xf32>
    %cst_9 = arith.constant 0.000000e+00 : f32
    %21 = vector.broadcast %cst_9 : f32 to vector<4x4xf32>
    %22 = vector.extract_strided_slice %20 {offsets = [0, 0], sizes = [4, 12], strides = [1, 1]} : vector<4x16xf32> to vector<4x12xf32>
    %23 = tpu.concatenate %21, %22 in 1 : vector<4x4xf32>, vector<4x12xf32> -> vector<4x16xf32>
    %24 = arith.addf %20, %23 : vector<4x16xf32>
    %cst_10 = arith.constant 0.000000e+00 : f32
    %25 = vector.broadcast %cst_10 : f32 to vector<4x8xf32>
    %26 = vector.extract_strided_slice %24 {offsets = [0, 0], sizes = [4, 8], strides = [1, 1]} : vector<4x16xf32> to vector<4x8xf32>
    %27 = tpu.concatenate %25, %26 in 1 : vector<4x8xf32>, vector<4x8xf32> -> vector<4x16xf32>
    %28 = arith.addf %24, %27 : vector<4x16xf32>
    %cst_11 = arith.constant dense<0.000000e+00> : vector<4xf32>
    %29 = vector.multi_reduction <add>, %12, %cst_11 [1] : vector<4x16xf32> to vector<4xf32>
    %30 = vector.shape_cast %29 : vector<4xf32> to vector<4x1xf32>
    %cst_12 = arith.constant 1.600000e+01 : f32
    %31 = vector.broadcast %cst_12 : f32 to vector<4x16xf32>
    %32 = arith.cmpf ole, %28, %31 : vector<4x16xf32>
    %33 = arith.andi %10, %32 : vector<4x16xi1>
    %cst_13 = arith.constant 1.000000e+00 : f32
    %cst_14 = arith.constant 0.000000e+00 : f32
    %34 = vector.broadcast %cst_13 : f32 to vector<4x16xf32>
    %35 = vector.broadcast %cst_14 : f32 to vector<4x16xf32>
    %36 = arith.select %33, %34, %35 : vector<4x16xi1>, vector<4x16xf32>
    %cst_15 = arith.constant 1.000000e+00 : f32
    %37 = vector.broadcast %cst_15 : f32 to vector<4x16xf32>
    %38 = arith.cmpf oeq, %28, %37 : vector<4x16xf32>
    %39 = arith.andi %10, %38 : vector<4x16xi1>
    %cst_16 = arith.constant 1.000000e+00 : f32
    %cst_17 = arith.constant 0.000000e+00 : f32
    %40 = vector.broadcast %cst_16 : f32 to vector<4x16xf32>
    %41 = vector.broadcast %cst_17 : f32 to vector<4x16xf32>
    %42 = arith.select %39, %40, %41 : vector<4x16xi1>, vector<4x16xf32>
    %cst_18 = arith.constant 1.600000e+01 : f32
    %43 = vector.broadcast %cst_18 : f32 to vector<4x1xf32>
    %44 = arith.subf %43, %30 : vector<4x1xf32>
    %cst_19 = arith.constant 0.000000e+00 : f32
    %45 = vector.broadcast %cst_19 : f32 to vector<4x1xf32>
    %46 = arith.maximumf %44, %45 : vector<4x1xf32>
    %47 = vector.broadcast %46 : vector<4x1xf32> to vector<4x16xf32>
    %48 = arith.mulf %47, %42 : vector<4x16xf32>
    %49 = arith.addf %36, %48 : vector<4x16xf32>
    %c0_20 = arith.constant 0 : index
    %c0_21 = arith.constant 0 : index
    %c0_22 = arith.constant 0 : index
    %50 = vector.load %arg2[%c0_20, %c0_21, %c0_22] : memref<1x16x8xf32, #tpu.memory_space<vmem>>, vector<1x16x8xf32>
    %51 = vector.shape_cast %50 : vector<1x16x8xf32> to vector<16x8xf32>
    %cst_23 = arith.constant dense<0.000000e+00> : vector<4x8xf32>
    %52 = tpu.matmul %49, %51, %cst_23 {dimension_numbers = #tpu.dot_dimension_numbers<[1], [0], [0], [1], [0, 0, 1, 1], [], []>} : vector<4x16xf32>, vector<16x8xf32>, vector<4x8xf32> -> vector<4x8xf32>
    %cst_24 = arith.constant 6.250000e-02 : f32
    %53 = vector.broadcast %cst_24 : f32 to vector<4x8xf32>
    %54 = arith.mulf %52, %53 : vector<4x8xf32>
    %c0_25 = arith.constant 0 : index
    %c0_26 = arith.constant 0 : index
    %c0_27 = arith.constant 0 : index
    %55 = vector.load %arg4[%c0_25, %c0_26, %c0_27] : memref<1x4x8xf32, #tpu.memory_space<vmem>>, vector<1x4x8xf32>
    %56 = vector.shape_cast %55 : vector<1x4x8xf32> to vector<4x8xf32>
    %57 = vector.shape_cast %54 : vector<4x8xf32> to vector<1x4x8xf32>
    tpu.vector_store %arg4[%c0_25, %c0_26, %c0_27], %57 {strides = array<i32>} : memref<1x4x8xf32, #tpu.memory_space<vmem>>, vector<1x4x8xf32>,
    return
  }
  func.func @transform_0(%arg0: i32) -> (i32, i32, i32) {
    %c0_i32 = arith.constant 0 : i32
    %c0_i32_0 = arith.constant 0 : i32
    %c0_i32_1 = arith.constant 0 : i32
    return %arg0, %c0_i32, %c0_i32_0 : i32, i32, i32
  }
  func.func @transform_1(%arg0: i32) -> (i32, i32, i32) {
    %c0_i32 = arith.constant 0 : i32
    %c0_i32_0 = arith.constant 0 : i32
    %c0_i32_1 = arith.constant 0 : i32
    return %arg0, %c0_i32, %c0_i32_0 : i32, i32, i32
  }
  func.func @transform_2(%arg0: i32) -> (i32, i32, i32) {
    %c0_i32 = arith.constant 0 : i32
    %c0_i32_0 = arith.constant 0 : i32
    %c0_i32_1 = arith.constant 0 : i32
    return %arg0, %c0_i32, %c0_i32_0 : i32, i32, i32
  }
  func.func @transform_3(%arg0: i32) -> (i32, i32, i32) {
    %c0_i32 = arith.constant 0 : i32
    %c0_i32_0 = arith.constant 0 : i32
    %c0_i32_1 = arith.constant 0 : i32
    return %arg0, %c0_i32, %c0_i32_0 : i32, i32, i32
  }
}

</mosaic_0001>

<bundles_post_ra>
// kernel: tpu_custom_call.1
= control target key start
LH: loop header
LB: loop body
LE: loop exit
PB: predicated region body
PF: predicated region fallthrough
CT: control target
= control target key end

     0   :  { %9 = vsyncpa [#allocation4], 0  ;;  %s865_s0 = inlined_call_operand.vmem [shape: f32[2,16,3], index: 0, kind: input, shape index: {}]   ;;  %s866_s1 = inlined_call_operand.vmem [shape: f32[2,16,8], index: 1, kind: input, shape index: {}]   ;;  %s867_s2 = inlined_call_operand.vmem [shape: f32[2,4,3], index: 2, kind: output, shape index: {0}]   ;;  %s868_s3 = inlined_call_operand.hbm [shape: f32[2,4,8], index: 3, kind: output, shape index: {1}]  }
   0x1   :  { %11 = vsyncpa [#allocation4 + $0x1], 0  ;;  %s707_s12 = smov 0   ;;  %s709_s13 = smov 0  }
   0x2   :  { %s711_s14 = smov 0   ;;  %s713_s15 = smov 0  }
   0x3 LB: > { %s728_s16 = sadd.s32 4294967295, %s671_s15   ;;  %s515_s17 = sadd.s32 4294967294, %s671_s15   ;;  %s671_s15 = sphi %s713_s15, %s874_s15   ;;  %s667_s14 = sphi %s711_s14, %s873_s14   ;;  %s663_s13 = sphi %s709_s13, %s872_s13   ;;  %s659_s12 = sphi %s707_s12, %s871_s12  }
   0x4   : > { %s732_s18 = sadd.s32 1, %s671_s15   ;;  %s102_s19 = sadd.s32 1, %s667_s14 }
   0x5   : > { %s99_s20 = ssub.s32 %s671_s15, %s732_s18  ;;  %p112_p0 = scmp.ne.s32.totalorder %s667_s14, %s663_s13 }
   0x6   : > { %p100_p1 = scmp.eq.s32.totalorder %s99_s20, 0  ;;  %p113_p2 = scmp.eq.s32.totalorder %s728_s16, 1 }
   0x7   : > { %p118_p3 = scmp.ne.s32.totalorder %s663_s13, %s659_s12  ;;  %p119_p4 = scmp.eq.s32.totalorder %s515_s17, 1 }
   0x8   : > { %s743_s21 = scalar_select %p100_p1, %s667_s14, %s102_s19  }
   0x9   : > { %p745_p5 = por %p113_p2, %p112_p0  ;;  %p749_p6 = por %p119_p4, %p118_p3 }
   0xa   : > { %p518_p7 = scmp.ge.s32.totalorder %s671_s15, 1  ;;  %p153_p8 = scmp.lt.s32.totalorder %s671_s15, 3 }
   0xc   : > { %p154_p9 = pnand %p518_p7, %p153_p8 }
   0xd   : > { %s183_s24 = sand.u32 (!%p154_p9), 1, %s663_s13   ;;  %p186_p10 = scmp.lt.s32.totalorder (!%p154_p9), %s728_s16, 1 }
   0xe   : > { %157 = sbr.rel (%p154_p9) target bundleno = 1290 (0x50a), region = 28  ;;  %s759_s25 = sshll.u32 (!%p154_p9), %s183_s24, 2 }
   0xf   : > { %s185_s11 = scalar_lea.vmem (!%p154_p9), [#allocation3], %s759_s25  ;;  %s789_s17 = smov (!%p154_p9), 0  }
  0x13   : > { %v202_v0 = vlaneseq  ;;  %s187_s26 = scalar_select %p186_p10, %s728_s16, 1  ;;  %v787_v6 = vmov 1e+10  }
  0x15   : > { %v761_v1 = vand.u32 127, %v202_v0  ;;  %v763_v2 = vshrl.u32 %v202_v0, 7  ;;  %s534_s27 = sshll.u32 %s187_s26, 4  ;;  %s524_s28 = sshll.u32 %s187_s26, 2 }
  0x16   : > { %s190_s4 = scalar_lea.vmem %s865_s0, %s534_s27  ;;  %s775_s7 = scalar_lea.vmem %s866_s1, %s534_s27 }
  0x17   : > { %v767_v3 = vadd.s32 8, %v763_v2  ;;  %s780_s10 = scalar_lea.vmem %s867_s2, %s524_s28  ;;  %v782_v4 = vld [vmem:[%s190_s4] sm:$0xff]  ;;  %v784_v5 = vld [vmem:[%s190_s4 + $0x8] sm:$0xff] }
  0x18 LB: >> { %vm214_vm0 = vcmask 122880   ;;  %vm262_vm6 = vcmask 23552   ;;  %s306_s26 = scalar_lea.vmem %s780_s10, %s679_s17  ;;  %vm307_vm9 = vcmask 16384   ;;  %v681_v51 = vmov 1.0   ;;  %s309_s27 = scalar_lea.vmem [#allocation2], %s679_s17  ;;  %s679_s17 = sphi %s789_s17, %s212_s17   ;;  %v675_v6 = vphi %v787_v6, %v311_v6  }
  0x19   : >> { %v215_v7 = vsel %vm214_vm0, %v675_v6, -inf  ;;  %s212_s17 = sadd.s32 1, %s679_s17  }
  0x1a   : >> { %216 = vmax.xlane.f32.xlu0 %v215_v7  ;;  %p209_p11 = scmp.ge.s32.totalorder %s212_s17, 4  }
  0x1b   : > { %v682_v55 = vmov (%p209_p11), 0.0   ;;  %s683_s28 = smov (%p209_p11), 1   ;;  %vm320_vm11 = vcmask (%p209_p11), 7168   ;;  %s684_s29 = smov (%p209_p11), 2   ;;  %vm327_vm12 = vcmask (%p209_p11), 15360   ;;  %vm344_vm13 = vcmask (%p209_p11), 125952  }
  0x1c   : > { %s685_s30 = smov (%p209_p11), 4   ;;  %vm334_vm14 = vcmask (%p209_p11), 31744   ;;  %s686_s4 = smov (%p209_p11), 8   ;;  %vm341_vm15 = vcmask (%p209_p11), 64512  }
  0x1d   : > { %s531_s5 = sshll.u32 (%p209_p11), %s728_s16, 2  ;;  %s407_s9 = sshll.u32 (%p209_p11), %s185_s11, 4  ;;  %s408_s9 = int_to_ptr.vmem [resolvable:$true] %s407_s9 }
  0x1e   : > { %s405_s8 = scalar_lea.hbm (%p209_p11), %s868_s3, %s531_s5  ;;  %s392_s17 = scalar_lea.sflag (%p209_p11), [#allocation4], %s183_s24 }
  0x1f   : > { %s409_s10 = sshll.u32 (%p209_p11), %s405_s8, 4  ;;  %s410_s10 = int_to_ptr.hbm [resolvable:$true] %s409_s10 }
  0x8d   : >> { %v217_v8 = vpop.xlane.xlu0 %216 }
  0x8e   : >> { %v218_v9 = vrot.slane %v217_v8, 4 }
  0x90   : >> { %v219_v10 = vmax.f32 %v217_v8, %v218_v9 }
  0x92   : >> { %v220_v11 = vrot.slane %v219_v10, 2 }
  0x94   : >> { %v221_v12 = vmax.f32 %v219_v10, %v220_v11 }
  0x96   : >> { %v222_v13 = vrot.slane %v221_v12, 1 }
  0x98   : >> { %v223_v14 = vmax.f32 %v221_v12, %v222_v13 }
  0x9a   : >> { %536 = vpush %v223_v14 }
  0xcb   : >> { %s537_s19 = spop %536 }
  0xcc   : >> { %v225_v15 = vstv %s537_s19  ;;  %s615_s19 = sshra.s32 (%p209_p11), %s410_s10, 4  ;;  %s616_s19 = int_to_ptr.hbm [resolvable:$true] %s615_s19 }
  0xcd   : >> { %vm226_vm1 = vcmp.eq.f32.partialorder %v675_v6, %v225_v15  ;;  %p622_p1 = scmp.lt.s32.totalorder (%p209_p11), %s616_s19, %s868_s3 }
  0xce   : >> { %v227_v16 = vsel %vm226_vm1, %v761_v1, 16 }
  0xcf   : >> { %v228_v17 = vsel %vm214_vm0, %v227_v16, 2147483647 }
  0xd0   : >> { %v230_v18 = vshra.s32 %v228_v17, 16  ;;  %v229_v20 = vand.u32 65535, %v228_v17 }
  0xd2   : >> { %v232_v19 = vcvt.s32.f32 %v230_v18  ;;  %v231_v22 = vcvt.s32.f32 %v229_v20 }
  0xd4   : >> { %233 = vmin.xlane.f32.xlu0 %v232_v19 }
 0x147   : >> { %v234_v21 = vpop.xlane.xlu0 %233 }
 0x148   : >> { %vm235_vm2 = vcmp.eq.f32.partialorder %v232_v19, %v234_v21  ;;  %v240_v24 = vcvt.f32.s32 %v234_v21 }
 0x149   : >> { %v236_v23 = vsel %vm235_vm2, %v231_v22, inf }
 0x14a   : >> { %237 = vmin.xlane.f32.xlu1 %v236_v23  ;;  %v241_v26 = vshll.u32 %v240_v24, 16 }
 0x1bd   : >> { %v238_v25 = vpop.xlane.xlu1 %237 }
 0x1be   : >> { %v239_v27 = vcvt.f32.s32 %v238_v25 }
 0x1c0   : >> { %v242_v28 = vadd.s32 %v241_v26, %v239_v27 }
 0x1c2   : >> { %v243_v29 = vrot.slane %v242_v28, 4 }
 0x1c4   : >> { %vm244_vm3 = vcmp.lt.s32.totalorder %v242_v28, %v243_v29 }
 0x1c5   : >> { %v245_v30 = vsel %vm244_vm3, %v242_v28, %v243_v29 }
 0x1c6   : >> { %v246_v31 = vrot.slane %v245_v30, 2 }
 0x1c8   : >> { %vm247_vm4 = vcmp.lt.s32.totalorder %v245_v30, %v246_v31 }
 0x1c9   : >> { %v248_v32 = vsel %vm247_vm4, %v245_v30, %v246_v31  ;;  %vm360_vm4 = vcmask (%p209_p11), 130048  }
 0x1ca   : >> { %v249_v33 = vrot.slane %v248_v32, 1 }
 0x1cc   : >> { %vm250_vm5 = vcmp.lt.s32.totalorder %v248_v32, %v249_v33 }
 0x1cd   : >> { %v251_v34 = vsel %vm250_vm5, %v248_v32, %v249_v33  ;;  %vm385_vm5 = vcmask (%p209_p11), 60416  }
 0x1ce   : >> { %538 = vpush %v251_v34 }
 0x1ff   : >> { %s539_s20 = spop %538 }
 0x200   : >> { %v253_v35 = vstv %s539_s20  ;;  %s617_s20 = scalar_lea.hbm (%p209_p11), %s616_s19, 4 }
 0x201   : >> { %vm254_vm7 = vcmp.eq.s32.totalorder %v763_v2, %v253_v35  ;;  %vm255_vm8 = vcmp.eq.s32.totalorder %v767_v3, %v253_v35  ;;  %v359_v3 = vld [vmem:[%s775_s7 + $0x8] sm:$0xff] (%p209_p11)  ;;  %p618_p12 = scmp.ne.s32.totalorder (%p209_p11), %s616_s19, %s617_s20 }
 0x202   : >> { %v260_v36 = vsel %vm254_vm7, %v782_v4, 0.0  ;;  %v261_v37 = vsel %vm255_vm8, %v784_v5, 0.0 }
 0x203   : >> { %v263_v38 = vsel %vm262_vm6, %v260_v36, 0.0  ;;  %v264_v39 = vsel %vm262_vm6, %v261_v37, 0.0  ;;  %p619_p13 = pnand (%p209_p11), %p618_p12, %p745_p5 }
 0x204   : >> { %v265_v40 = vadd.f32 %v264_v39, %v263_v38 }
 0x205   : > { %p620_p0 = pneg (%p209_p11), %p619_p13 }
 0x206   : >> { %v266_v41 = vrot.slane %v265_v40, 4 }
 0x208   : >> { %v267_v42 = vadd.f32 %v266_v41, %v265_v40 }
 0x20a   : >> { %v268_v43 = vrot.slane %v267_v42, 2 }
 0x20c   : >> { %v269_v44 = vadd.f32 %v268_v43, %v267_v42 }
 0x20e   : >> { %v270_v45 = vrot.slane %v269_v44, 1 }
 0x210   : >> { %v271_v46 = vadd.f32 %v270_v45, %v269_v44 }
 0x212   : >> { %v273_v47 = vsub.f32 %v784_v5, %v271_v46  ;;  %308 = vst.msk [vmem:[%s306_s26] sm:$0x1] %vm307_vm9, %v271_v46  ;;  %v272_v49 = vsub.f32 %v782_v4, %v271_v46  ;;  %v358_v4 = vld [vmem:[%s775_s7] sm:$0xff] (%p209_p11) }
 0x214   : >> { %v275_v48 = vmul.f32 %v273_v47, %v273_v47  ;;  %v274_v50 = vmul.f32 %v272_v49, %v272_v49 }
 0x216   : >> { %525 = vmatpush.xpose.msk.msra.mxu0 %vm262_vm6, %v275_v48 }
 0x21a   : >> { %526 = vmatpush.xpose.msk.msra.mxu0 %vm262_vm6, %v274_v50 }
 0x21d   : >> { %527 = vmatmul.msk.f32.vlgmr.msra.gmra.mxu0 %vm262_vm6, %v681_v51 }
 0x21e   : > { %378 = vmatpush.msra.mxu0 (%p209_p11), %v359_v3 }
 0x220   : > { %379 = vmatpush.msra.mxu0 (%p209_p11), %v358_v4 }
 0x299   : > { %211 = sbr.rel (!%p209_p11) target bundleno = 24 (0x18), region = 87 }
 0x29a   : >> { %v302_v52 = vpop.f32.mrf.mxu0 }
 0x29b   : >> { %v305_v53 = vmax.f32 %v302_v52, 0.0 }
 0x29d   : >> { %310 = vst.msk [vmem:[%s309_s27] sm:$0x1] %vm214_vm0, %v305_v53  ;;  %v311_v6 = vmin.f32 %v675_v6, %v305_v53   ;;  %s621_s27 = scalar_lea.hbm (%p209_p11), %s868_s3, 8 }
 0x29e   : > { %p623_p2 = scmp.lt.s32.totalorder %s621_s27, %s617_s20 }
 0x2a0   : > { %p624_p3 = por %p623_p2, %p622_p1 }
 0x2a2   : > { %p625_p4 = pnand %p624_p3, %p620_p0 }
 0x2a4   : > { %v312_v54 = vld [vmem:[#allocation2] sm:$0xf] }
 0x2a5   : > { %vm313_vm10 = vcmp.lt.f32.partialorder %v312_v54, 0.25 }
 0x2a6   : > { %v528_v56 = vsel %vm313_vm10, 1.0, %v682_v55 }
 0x2a7   : > { %317 = vrot.lane.b32.xlu0 %v528_v56, %s683_s28  ;;  %v345_v63 = vsel %vm344_vm13, %v528_v56, 0.0 }
 0x2a8   : > { %346 = vadd.xlane.f32.xlu2 %v345_v63 }
 0x319   : > { %v318_v57 = vpop.permute.xlu0 %317 }
 0x31a   : > { %v321_v58 = vsel %vm320_vm11, 0.0, %v318_v57 }
 0x31b   : > { %v322_v59 = vadd.f32 %v528_v56, %v321_v58  ;;  %v347_v5 = vpop.xlane.xlu2 %346 }
 0x31c   : > { %v354_v7 = vsub.f32 16.0, %v347_v5 }
 0x31d   : > { %324 = vrot.lane.b32.xlu0 %v322_v59, %s684_s29 }
 0x31e   : > { %v355_v10 = vmax.f32 %v354_v7, 0.0 }
 0x38f   : > { %v325_v60 = vpop.permute.xlu0 %324 }
 0x390   : > { %v328_v61 = vsel %vm327_vm12, 0.0, %v325_v60 }
 0x391   : > { %v329_v62 = vadd.f32 %v328_v61, %v322_v59 }
 0x393   : > { %331 = vrot.lane.b32.xlu1 %v329_v62, %s685_s30 }
 0x405   : > { %v332_v0 = vpop.permute.xlu1 %331 }
 0x406   : > { %v335_v1 = vsel %vm334_vm14, 0.0, %v332_v0 }
 0x407   : > { %v336_v2 = vadd.f32 %v335_v1, %v329_v62 }
 0x409   : > { %338 = vrot.lane.b32.xlu1 %v336_v2, %s686_s4 }
 0x47b   : > { %v339_v6 = vpop.permute.xlu1 %338 }
 0x47c   : > { %v342_v8 = vsel %vm341_vm15, 0.0, %v339_v6 }
 0x47d   : > { %v343_v9 = vadd.f32 %v342_v8, %v336_v2 }
 0x47f   : > { %vm348_vm0 = vcmp.le.f32.partialorder %v343_v9, 16.0  ;;  %vm351_vm1 = vcmp.eq.f32.partialorder %v343_v9, 1.0 }
 0x480   : > { %vm349_vm2 = vmand %vm313_vm10, %vm348_vm0 }
 0x481   : > { %vm352_vm3 = vmand %vm313_vm10, %vm351_vm1  ;;  %v350_v13 = vsel %vm349_vm2, 1.0, %v682_v55 }
 0x482   : > { %v353_v11 = vsel %vm352_vm3, 1.0, %v682_v55 }
 0x483   : > { %v356_v12 = vmul.f32 %v355_v10, %v353_v11 }
 0x485   : > { %v357_v14 = vadd.f32 %v356_v12, %v350_v13 }
 0x487   : > { %529 = vmatmul.msk.f32.vlgmr.msra.gmra.mxu0 %vm360_vm4, %v357_v14 }
 0x504   : > { %v381_v15 = vpop.f32.mrf.mxu0 }
 0x505   : > { %v384_v16 = vmul.f32 0.0625, %v381_v15 }
 0x507   : > { %386 = vst.msk [vmem:[%s185_s11] sm:$0xf] %vm385_vm5, %v384_v16 }
 0x508   : > { %628 = shalt.err (!%p625_p4)
}
 0x509   : > { %540 = dma.vmem_to_hbm [thread:$0]  (%p745_p5), %s408_s9, 64, %s410_s10, %s392_s17  }
 0x50a PF: > { %p546_p7 = scmp.ge.s32.totalorder %s671_s15, 2  ;;  %s428_s24 = sand.u32 1, %s659_s12  }
 0x50b   : > { %s429_s25 = scalar_lea.sflag [#allocation4], %s428_s24 }
 0x50c   : > { %p543_p8 = pnand %p546_p7, %p749_p6 }
 0x50e   : > { %p544_p9 = pneg %p543_p8 }
 0x510   : > { %654 = dma.done.wait (%p544_p9), %s429_s25, 64  }
 0x511   : > { %656 = vsyncadd (%p544_p9), %s429_s25, 4294967232  ;;  %p14_p10 = scmp.ge.s32.totalorder %s732_s18, 4   ;;  %s871_s12 = smov %s663_s13 }
 0x512   : > { %s872_s13 = smov %s667_s14  ;;  %s873_s14 = smov %s743_s21 }
 0x513   : > { %s874_s15 = smov %s732_s18  ;;  %16 = sbr.rel (!%p14_p10) target bundleno = 3 (0x3), region = 98 }
 0x518   :  { %435 = vsyncpa [#allocation4], 1 }
 0x519   :  { %437 = vsyncpa [#allocation4 + $0x1], 1 }

</bundles_post_ra>
